<compile_context>
chip_gen: v7x
topology: tpu7x:2x2x1
jax: 0.10.0
libtpu: 0.0.40
codegen_flags: <defaults>
</compile_context>

<pallas_src>
import functools

import jax
import jax.numpy as jnp
from jax.experimental import pallas as pl
from jax.experimental.pallas import tpu as pltpu


def _round_up(n: int, m: int) -> int:
    return ((n + m - 1) // m) * m


def _mlp_kernel(*refs, n_layers: int):
    """Whole-MLP forward for one batch tile.

    refs = (x_ref, w0_ref, b0_ref, w1_ref, b1_ref, ..., out_ref)
    Hidden layers apply ReLU; the final layer is affine only.
    Weights are (in, out), biases are (1, out); feature dims are pre-padded
    to multiples of 128 with zeros in the wrapper.
    """
    x_ref = refs[0]
    out_ref = refs[-1]
    param_refs = refs[1:-1]

    h = x_ref[...].astype(jnp.float32)
    for li in range(n_layers):
        w = param_refs[2 * li][...]
        b = param_refs[2 * li + 1][...]
        if w.shape[0] == 1:
            # K=1 "matmul" is just an outer product: do it on the VPU as a
            # broadcast multiply; an MXU push/pop here would be pure latency.
            h = h[:, 0:1] * w[0:1, :] + b
        else:
            h = jnp.dot(h, w, preferred_element_type=jnp.float32) + b
        if li < n_layers - 1:  # ReLU on hidden layers only
            h = jnp.maximum(h, 0.0)
    out_ref[...] = h.astype(out_ref.dtype)


def init_params(key, num_neurons, num_outputs, dtype=jnp.float32):
    """Deterministic nn.Linear-style init (uniform +-1/sqrt(fan_in)).

    Returns a flat list [w0, b0, w1, b1, ...] with w as (in, out) and
    b as (1, out), in the *original* (unpadded) sizes of the torch module.
    """
    params = []
    in_size = 1
    sizes = list(num_neurons) + [num_outputs]
    for out_size in sizes:
        key, kw, kb = jax.random.split(key, 3)
        bound = 1.0 / jnp.sqrt(jnp.array(in_size, dtype=jnp.float32))
        w = jax.random.uniform(kw, (in_size, out_size), dtype, -bound, bound)
        b = jax.random.uniform(kb, (1, out_size), dtype, -bound, bound)
        params += [w, b]
        in_size = out_size
    return params


def _pad_params(params, lane=128):
    """Zero-pad every layer's output width up to a multiple of `lane`.

    Padded activation lanes stay exactly zero through bias-add (zero bias
    pad) and ReLU, and padded weight rows are zero, so the math is unchanged.
    """
    padded = []
    in_pad = params[0].shape[0]  # keep original in_features (== 1)
    for li in range(len(params) // 2):
        w, b = params[2 * li], params[2 * li + 1]
        in_sz, out_sz = w.shape
        out_pad = _round_up(out_sz, lane)
        w_p = jnp.zeros((in_pad, out_pad), w.dtype).at[:in_sz, :out_sz].set(w)
        b_p = jnp.zeros((1, out_pad), b.dtype).at[:, :out_sz].set(b)
        padded += [w_p, b_p]
        in_pad = out_pad
    return padded


def _choose_batch_tile(B: int) -> int:
    # Small batches: one block, no grid overhead (note: on v7x a single block
    # leaves the second TensorCore idle, which is fine at these sizes).
    if B <= 1024:
        return B
    # Large batches: largest tile in {1024, 512, 256} that divides B so the
    # matmul M dim is a multiple of 128 and the parallel grid axis can be
    # sharded across v7x's two TensorCores.
    for t in (1024, 512, 256):
        if B % t == 0:
            return t
    return B


def mlp_forward(x, params, *, batch_tile=None):
    """Run the MLP forward pass as a single Pallas kernel, tiled over batch."""
    B, in_features = x.shape
    n_layers = len(params) // 2
    num_outputs = params[-1].shape[-1]

    padded = _pad_params(params)
    out_pad = padded[-1].shape[-1]  # lane-dense output width (multiple of 128)

    if batch_tile is None:
        batch_tile = _choose_batch_tile(B)
    assert B % batch_tile == 0, "batch must be divisible by batch_tile"
    assert batch_tile == B or batch_tile % 8 == 0, (
        "batch_tile must be the full batch or a multiple of 8")

    # x tile: (batch_tile, in_features); weights/biases: full-array blocks
    # with constant index_map (no per-step re-DMA of params is needed;
    # pipeline_mode=pl.Buffered(1) would shave the duplicate buffer but is
    # not required at these sizes).
    x_spec = pl.BlockSpec((batch_tile, in_features), lambda i: (i, 0))
    param_specs = [pl.BlockSpec(p.shape, lambda i: (0, 0)) for p in padded]
    out_spec = pl.BlockSpec((batch_tile, out_pad), lambda i: (i, 0))

    kernel = functools.partial(_mlp_kernel, n_layers=n_layers)

    y_padded = pl.pallas_call(
        kernel,
        out_shape=jax.ShapeDtypeStruct((B, out_pad), x.dtype),
        grid_spec=pltpu.PrefetchScalarGridSpec(
            num_scalar_prefetch=0,
            grid=(B // batch_tile,),
            in_specs=[x_spec] + param_specs,
            out_specs=out_spec,
        ),
        compiler_params=pltpu.CompilerParams(
            dimension_semantics=("parallel",)
        ),
    )(x, *padded)

    return y_padded[:, :num_outputs]


def mlp_reference(x, params):
    """Pure-JAX reference for correctness checking (unpadded params)."""
    n_layers = len(params) // 2
    h = x
    for li in range(n_layers):
        w, b = params[2 * li], params[2 * li + 1]
        h = h @ w + b
        if li < n_layers - 1:
            h = jnp.maximum(h, 0.0)
    return h


if __name__ == "__main__":
    # Architecture consistent with the torch module defaults:
    # input_size=1, hidden layers num_neurons=[32, 64], num_outputs=190.
    num_neurons = [32, 64]
    num_outputs = 190
    batch = 16

    key = jax.random.PRNGKey(0)
    key, kx = jax.random.split(key)
    x = jax.random.uniform(kx, (batch, 1), jnp.float32)  # e.g. concentrations

    params = init_params(key, num_neurons, num_outputs)

    y = mlp_forward(x, params)
    y = jax.block_until_ready(y)

    y_ref = mlp_reference(x, params)
    assert y.shape == (batch, num_outputs)
    assert jnp.allclose(y, y_ref, atol=1e-5, rtol=1e-5), "mismatch vs reference"

    print("KERNEL_OK")
</pallas_src>

<mosaic_0001>
module attributes {stable_mosaic.version = 11 : i64} {
  func.func @_mlp_kernel(%arg0: i32, %arg1: memref<16x1xf32, #tpu.memory_space<vmem>>, %arg2: memref<1x128xf32, #tpu.memory_space<vmem>>, %arg3: memref<1x128xf32, #tpu.memory_space<vmem>>, %arg4: memref<128x128xf32, #tpu.memory_space<vmem>>, %arg5: memref<1x128xf32, #tpu.memory_space<vmem>>, %arg6: memref<128x256xf32, #tpu.memory_space<vmem>>, %arg7: memref<1x256xf32, #tpu.memory_space<vmem>>, %arg8: memref<16x256xf32, #tpu.memory_space<vmem>>) attributes {dimension_semantics = [#tpu.dimension_semantics<parallel>], iteration_bounds = array<i64: 1>, scalar_prefetch = 0 : i64, scratch_operands = 0 : i64, tpu.core_type = #tpu.core_type<tc>, window_params = [{transform_indices = @transform_0, window_bounds = array<i64: 16, 1>}, {pipeline_mode = #tpu.pipeline_mode<synchronous>, transform_indices = @transform_1, window_bounds = array<i64: 1, 128>}, {pipeline_mode = #tpu.pipeline_mode<synchronous>, transform_indices = @transform_2, window_bounds = array<i64: 1, 128>}, {pipeline_mode = #tpu.pipeline_mode<synchronous>, transform_indices = @transform_3, window_bounds = array<i64: 128, 128>}, {pipeline_mode = #tpu.pipeline_mode<synchronous>, transform_indices = @transform_4, window_bounds = array<i64: 1, 128>}, {pipeline_mode = #tpu.pipeline_mode<synchronous>, transform_indices = @transform_5, window_bounds = array<i64: 128, 256>}, {pipeline_mode = #tpu.pipeline_mode<synchronous>, transform_indices = @transform_6, window_bounds = array<i64: 1, 256>}, {transform_indices = @transform_7, window_bounds = array<i64: 16, 256>}]} {
    %c0 = arith.constant 0 : index
    %c0_0 = arith.constant 0 : index
    %0 = vector.load %arg1[%c0, %c0_0] : memref<16x1xf32, #tpu.memory_space<vmem>>, vector<16x1xf32>
    %c0_1 = arith.constant 0 : index
    %c0_2 = arith.constant 0 : index
    %1 = vector.load %arg2[%c0_1, %c0_2] : memref<1x128xf32, #tpu.memory_space<vmem>>, vector<1x128xf32>
    %c0_3 = arith.constant 0 : index
    %c0_4 = arith.constant 0 : index
    %2 = vector.load %arg3[%c0_3, %c0_4] : memref<1x128xf32, #tpu.memory_space<vmem>>, vector<1x128xf32>
    %3 = vector.broadcast %0 : vector<16x1xf32> to vector<16x128xf32>
    %4 = vector.broadcast %1 : vector<1x128xf32> to vector<16x128xf32>
    %5 = arith.mulf %3, %4 : vector<16x128xf32>
    %6 = vector.broadcast %2 : vector<1x128xf32> to vector<16x128xf32>
    %7 = arith.addf %5, %6 : vector<16x128xf32>
    %cst = arith.constant 0.000000e+00 : f32
    %8 = vector.broadcast %cst : f32 to vector<16x128xf32>
    %9 = arith.maximumf %7, %8 : vector<16x128xf32>
    %c0_5 = arith.constant 0 : index
    %c0_6 = arith.constant 0 : index
    %10 = vector.load %arg4[%c0_5, %c0_6] : memref<128x128xf32, #tpu.memory_space<vmem>>, vector<128x128xf32>
    %c0_7 = arith.constant 0 : index
    %c0_8 = arith.constant 0 : index
    %11 = vector.load %arg5[%c0_7, %c0_8] : memref<1x128xf32, #tpu.memory_space<vmem>>, vector<1x128xf32>
    %cst_9 = arith.constant dense<0.000000e+00> : vector<16x128xf32>
    %12 = tpu.matmul %9, %10, %cst_9 {dimension_numbers = #tpu.dot_dimension_numbers<[1], [0], [0], [1], [0, 0, 1, 1], [], []>} : vector<16x128xf32>, vector<128x128xf32>, vector<16x128xf32> -> vector<16x128xf32>
    %13 = vector.broadcast %11 : vector<1x128xf32> to vector<16x128xf32>
    %14 = arith.addf %12, %13 : vector<16x128xf32>
    %cst_10 = arith.constant 0.000000e+00 : f32
    %15 = vector.broadcast %cst_10 : f32 to vector<16x128xf32>
    %16 = arith.maximumf %14, %15 : vector<16x128xf32>
    %c0_11 = arith.constant 0 : index
    %c0_12 = arith.constant 0 : index
    %17 = vector.load %arg6[%c0_11, %c0_12] : memref<128x256xf32, #tpu.memory_space<vmem>>, vector<128x256xf32>
    %c0_13 = arith.constant 0 : index
    %c0_14 = arith.constant 0 : index
    %18 = vector.load %arg7[%c0_13, %c0_14] : memref<1x256xf32, #tpu.memory_space<vmem>>, vector<1x256xf32>
    %cst_15 = arith.constant dense<0.000000e+00> : vector<16x256xf32>
    %19 = tpu.matmul %16, %17, %cst_15 {dimension_numbers = #tpu.dot_dimension_numbers<[1], [0], [0], [1], [0, 0, 1, 1], [], []>} : vector<16x128xf32>, vector<128x256xf32>, vector<16x256xf32> -> vector<16x256xf32>
    %20 = vector.broadcast %18 : vector<1x256xf32> to vector<16x256xf32>
    %21 = arith.addf %19, %20 : vector<16x256xf32>
    %c0_16 = arith.constant 0 : index
    %c0_17 = arith.constant 0 : index
    %22 = vector.load %arg8[%c0_16, %c0_17] : memref<16x256xf32, #tpu.memory_space<vmem>>, vector<16x256xf32>
    tpu.vector_store %arg8[%c0_16, %c0_17], %21 {strides = array<i32>} : memref<16x256xf32, #tpu.memory_space<vmem>>, vector<16x256xf32>,
    return
  }
  func.func @transform_0(%arg0: i32) -> (i32, i32) {
    %c0_i32 = arith.constant 0 : i32
    %c0_i32_0 = arith.constant 0 : i32
    return %arg0, %c0_i32 : i32, i32
  }
  func.func @transform_1(%arg0: i32) -> (i32, i32) {
    %c0_i32 = arith.constant 0 : i32
    %c0_i32_0 = arith.constant 0 : i32
    %c0_i32_1 = arith.constant 0 : i32
    return %c0_i32, %c0_i32_0 : i32, i32
  }
  func.func @transform_2(%arg0: i32) -> (i32, i32) {
    %c0_i32 = arith.constant 0 : i32
    %c0_i32_0 = arith.constant 0 : i32
    %c0_i32_1 = arith.constant 0 : i32
    return %c0_i32, %c0_i32_0 : i32, i32
  }
  func.func @transform_3(%arg0: i32) -> (i32, i32) {
    %c0_i32 = arith.constant 0 : i32
    %c0_i32_0 = arith.constant 0 : i32
    %c0_i32_1 = arith.constant 0 : i32
    return %c0_i32, %c0_i32_0 : i32, i32
  }
  func.func @transform_4(%arg0: i32) -> (i32, i32) {
    %c0_i32 = arith.constant 0 : i32
    %c0_i32_0 = arith.constant 0 : i32
    %c0_i32_1 = arith.constant 0 : i32
    return %c0_i32, %c0_i32_0 : i32, i32
  }
  func.func @transform_5(%arg0: i32) -> (i32, i32) {
    %c0_i32 = arith.constant 0 : i32
    %c0_i32_0 = arith.constant 0 : i32
    %c0_i32_1 = arith.constant 0 : i32
    return %c0_i32, %c0_i32_0 : i32, i32
  }
  func.func @transform_6(%arg0: i32) -> (i32, i32) {
    %c0_i32 = arith.constant 0 : i32
    %c0_i32_0 = arith.constant 0 : i32
    %c0_i32_1 = arith.constant 0 : i32
    return %c0_i32, %c0_i32_0 : i32, i32
  }
  func.func @transform_7(%arg0: i32) -> (i32, i32) {
    %c0_i32 = arith.constant 0 : i32
    %c0_i32_0 = arith.constant 0 : i32
    return %arg0, %c0_i32 : i32, i32
  }
}

</mosaic_0001>

<bundles_post_ra>
// kernel: tpu_custom_call.1
= control target key start
LH: loop header
LB: loop body
LE: loop exit
PB: predicated region body
PF: predicated region fallthrough
CT: control target
= control target key end

     0   :  { %12 = vsyncpa [#allocation3], 0  ;;  %s641_s0 = inlined_call_operand.vmem [shape: f32[16,1], index: 0, kind: input, shape index: {}]   ;;  %s642_s1 = inlined_call_operand.vmem [shape: f32[1,128], index: 1, kind: input, shape index: {}]   ;;  %s643_s2 = inlined_call_operand.vmem [shape: f32[1,128], index: 2, kind: input, shape index: {}]   ;;  %s644_s3 = inlined_call_operand.hbm [shape: f32[128,128], index: 3, kind: input, shape index: {}]   ;;  %s645_s4 = inlined_call_operand.vmem [shape: f32[1,128], index: 4, kind: input, shape index: {}]   ;;  %s646_s5 = inlined_call_operand.hbm [shape: f32[128,256], index: 5, kind: input, shape index: {}]   ;;  %s647_s6 = inlined_call_operand.vmem [shape: f32[1,256], index: 6, kind: input, shape index: {}]   ;;  %s648_s7 = inlined_call_operand.hbm [shape: f32[16,256], index: 7, kind: output, shape index: {}]  }
   0x1   :  { %13 = vsyncpa [#allocation6], 0 }
   0x2   :  { %14 = vsyncpa [#allocation4], 0  ;;  %s532_s24 = smov [#allocation2]   ;;  %s460_s28 = scalar_lea.hbm %s644_s3, 2048 }
   0x3   :  { %s26_s25 = sshll.u32 %s532_s24, 4  ;;  %p461_p0 = scmp.ne.s32.totalorder %s644_s3, %s460_s28  ;;  %s27_s25 = int_to_ptr.vmem [resolvable:$true] %s26_s25 }
   0x4   :  { %p464_p1 = scmp.lt.u32.totalorder %s460_s28, %s644_s3 }
   0x6   :  { %p466_p2 = pnand %p464_p1, %p461_p0 }
   0x8   :  { %469 = shalt.err (!%p466_p2)
}
   0x9   :  { %s470_s10 = scalar_lea.vmem %s27_s25, 2048  ;;  %p475_p4 = scmp.lt.s32.totalorder %s27_s25, %s27_s25 }
   0xa   :  { %p471_p3 = scmp.ne.s32.totalorder %s27_s25, %s470_s10  ;;  %p476_p5 = scmp.lt.s32.totalorder %s470_s10, %s470_s10 }
   0xc   :  { %p477_p6 = por %p476_p5, %p475_p4 }
   0xe   :  { %p478_p7 = pnand %p477_p6, %p471_p3 }
  0x10   :  { %481 = shalt.err (!%p478_p7)
}
  0x11   :  { %s533_s11 = smov 128   ;;  %s534_s12 = smov 8  }
  0x12   :  { %32 = dma.hbm_to_vmem [thread:$0]  %s644_s3, 2048, %s27_s25, [#allocation3], %s533_s11, %s533_s11, %s534_s12  }
  0x13   :  { %s535_s15 = smov [#allocation5]   ;;  %s482_s19 = scalar_lea.hbm %s646_s5, 4096 }
  0x14   :  { %s40_s16 = sshll.u32 %s535_s15, 4  ;;  %p483_p8 = scmp.ne.s32.totalorder %s646_s5, %s482_s19  ;;  %s41_s16 = int_to_ptr.vmem [resolvable:$true] %s40_s16 }
  0x15   :  { %p486_p9 = scmp.lt.u32.totalorder %s482_s19, %s646_s5 }
  0x17   :  { %p488_p10 = pnand %p486_p9, %p483_p8 }
  0x19   :  { %491 = shalt.err (!%p488_p10)
}
  0x1a   :  { %s492_s24 = scalar_lea.vmem %s41_s16, 4096  ;;  %p497_p12 = scmp.lt.s32.totalorder %s41_s16, %s41_s16 }
  0x1b   :  { %p493_p11 = scmp.ne.s32.totalorder %s41_s16, %s492_s24  ;;  %p498_p13 = scmp.lt.s32.totalorder %s492_s24, %s492_s24 }
  0x1d   :  { %p499_p0 = por %p498_p13, %p497_p12 }
  0x1f   :  { %p500_p1 = pnand %p499_p0, %p493_p11 }
  0x21   :  { %503 = shalt.err (!%p500_p1)
}
  0x22   :  { %s536_s3 = smov 256   ;;  %s537_s25 = smov 16  }
  0x23   :  { %46 = dma.hbm_to_vmem [thread:$0]  %s646_s5, 4096, %s41_s16, [#allocation6], %s536_s3, %s536_s3, %s537_s25  }
  0x24   :  { %526 = dma.done.wait [#allocation3], 2048  }
  0x25   :  { %527 = vsyncadd [#allocation3], 4294965248 }
  0x26   :  { %528 = dma.done.wait [#allocation6], 4096  }
  0x27   :  { %529 = vsyncadd [#allocation6], 4294963200  ;;  %v538_v0 = vmov 0   ;;  %v55_v1 = vld [vmem:[%s641_s0] sm:$0xff]  ;;  %v88_v3 = vld [vmem:[#allocation2 + $0x8] sm:$0xff] }
  0x28   :  { %459 = vset.pattern.permute.xlu0 %v538_v0  ;;  %v87_v2 = vld [vmem:[#allocation2] sm:$0xff]  ;;  %v89_v4 = vld [vmem:[#allocation2 + $0x10] sm:$0xff]  ;;  %v90_v5 = vld [vmem:[#allocation2 + $0x18] sm:$0xff] }
  0x29   :  { %61 = vperm.xlu0 %459, %v55_v1   ;;  %v56_v6 = vld [vmem:[%s641_s0 + $0x8] sm:$0xff]  ;;  %v386_v7 = vpack.c.bf16 %v88_v3, %v87_v2  ;;  %v390_v8 = vpack.c.bf16 %v90_v5, %v89_v4  ;;  %v91_v9 = vld [vmem:[#allocation2 + $0x20] sm:$0xff]  ;;  %v93_v12 = vld [vmem:[#allocation2 + $0x30] sm:$0xff] }
  0x2a   :  { %v92_v10 = vld [vmem:[#allocation2 + $0x28] sm:$0xff]  ;;  %v94_v13 = vld [vmem:[#allocation2 + $0x38] sm:$0xff]  ;;  %v95_v15 = vld [vmem:[#allocation2 + $0x40] sm:$0xff] }
  0x2b   :  { %387 = vmatprep.subr.bf16.mxu0 %v386_v7  ;;  %v394_v11 = vpack.c.bf16 %v92_v10, %v91_v9  ;;  %v398_v14 = vpack.c.bf16 %v94_v13, %v93_v12  ;;  %v96_v16 = vld [vmem:[#allocation2 + $0x48] sm:$0xff]  ;;  %v190_v18 = vld [vmem:[#allocation5 + $0x18] sm:$0xff]  ;;  %v187_v19 = vld [vmem:[#allocation5] sm:$0xff] }
  0x2c   :  { %389 = vmatpush3.bf16.msra.mxu0 %v386_v7  ;;  %v188_v17 = vld [vmem:[#allocation5 + $0x8] sm:$0xff]  ;;  %v189_v21 = vld [vmem:[#allocation5 + $0x10] sm:$0xff]  ;;  %v194_v23 = vld [vmem:[#allocation5 + $0x38] sm:$0xff]  ;;  %v402_v29 = vpack.c.bf16 %v96_v16, %v95_v15 }
  0x2d   :  { %66 = vperm.xlu0 %459, %v56_v6   ;;  %391 = vmatprep.subr.bf16.mxu0 %v390_v8  ;;  %v418_v20 = vpack.c.bf16 %v190_v18, %v188_v17  ;;  %v192_v22 = vld [vmem:[#allocation5 + $0x28] sm:$0xff]  ;;  %v420_v24 = vpack.c.bf16 %v189_v21, %v187_v19  ;;  %v191_v26 = vld [vmem:[#allocation5 + $0x20] sm:$0xff]  ;;  %v193_v27 = vld [vmem:[#allocation5 + $0x30] sm:$0xff]  ;;  %v539_v21 = vmov 0.0  }
  0x2e   :  { %v422_v25 = vpack.c.bf16 %v194_v23, %v192_v22  ;;  %v196_v28 = vld [vmem:[#allocation5 + $0x48] sm:$0xff]  ;;  %v198_v30 = vld [vmem:[#allocation5 + $0x58] sm:$0xff]  ;;  %v97_v31 = vld [vmem:[#allocation2 + $0x50] sm:$0xff]  ;;  %v424_v33 = vpack.c.bf16 %v193_v27, %v191_v26  ;;  %295 = vmatprep.mubr.f32.mxu1 %v539_v21 }
  0x2f   :  { %419 = vmatprep.subr.bf16.mxu1 %v418_v20  ;;  %v98_v32 = vld [vmem:[#allocation2 + $0x58] sm:$0xff]  ;;  %v426_v34 = vpack.c.bf16 %v198_v30, %v196_v28  ;;  %v195_v35 = vld [vmem:[#allocation5 + $0x40] sm:$0xff]  ;;  %v197_v36 = vld [vmem:[#allocation5 + $0x50] sm:$0xff] }
  0x30   :  { %393 = vmatpush3.bf16.msra.mxu0 %v390_v8  ;;  %421 = vmatpush1.bf16.msra.mxu1 %v420_v24  ;;  %v200_v37 = vld [vmem:[#allocation5 + $0x68] sm:$0xff]  ;;  %v202_v38 = vld [vmem:[#allocation5 + $0x78] sm:$0xff]  ;;  %v406_v39 = vpack.c.bf16 %v98_v32, %v97_v31  ;;  %v99_v40 = vld [vmem:[#allocation2 + $0x60] sm:$0xff]  ;;  %v428_v42 = vpack.c.bf16 %v197_v36, %v195_v35 }
  0x31   :  { %395 = vmatprep.subr.bf16.mxu0 %v394_v11  ;;  %423 = vmatprep.subr.bf16.mxu1 %v422_v25  ;;  %v100_v41 = vld [vmem:[#allocation2 + $0x68] sm:$0xff]  ;;  %v430_v43 = vpack.c.bf16 %v202_v38, %v200_v37  ;;  %v199_v44 = vld [vmem:[#allocation5 + $0x60] sm:$0xff]  ;;  %v201_v45 = vld [vmem:[#allocation5 + $0x70] sm:$0xff] }
  0x32   :  { %v204_v46 = vld [vmem:[#allocation5 + $0x88] sm:$0xff]  ;;  %v206_v47 = vld [vmem:[#allocation5 + $0x98] sm:$0xff]  ;;  %v410_v48 = vpack.c.bf16 %v100_v41, %v99_v40  ;;  %v101_v49 = vld [vmem:[#allocation2 + $0x70] sm:$0xff]  ;;  %v432_v51 = vpack.c.bf16 %v201_v45, %v199_v44 }
  0x33   :  { %v102_v50 = vld [vmem:[#allocation2 + $0x78] sm:$0xff]  ;;  %v434_v52 = vpack.c.bf16 %v206_v47, %v204_v46  ;;  %v203_v53 = vld [vmem:[#allocation5 + $0x80] sm:$0xff]  ;;  %v205_v54 = vld [vmem:[#allocation5 + $0x90] sm:$0xff] }
  0x34   :  { %397 = vmatpush3.bf16.msra.mxu0 %v394_v11  ;;  %425 = vmatpush1.bf16.msra.mxu1 %v424_v33  ;;  %v208_v55 = vld [vmem:[#allocation5 + $0xa8] sm:$0xff]  ;;  %v210_v56 = vld [vmem:[#allocation5 + $0xb8] sm:$0xff]  ;;  %v414_v57 = vpack.c.bf16 %v102_v50, %v101_v49  ;;  %v436_v58 = vpack.c.bf16 %v205_v54, %v203_v53  ;;  %v207_v60 = vld [vmem:[#allocation5 + $0xa0] sm:$0xff] }
  0x35   :  { %399 = vmatprep.subr.bf16.mxu0 %v398_v14  ;;  %427 = vmatprep.subr.bf16.mxu1 %v426_v34  ;;  %v438_v59 = vpack.c.bf16 %v210_v56, %v208_v55  ;;  %v209_v61 = vld [vmem:[#allocation5 + $0xb0] sm:$0xff]  ;;  %v212_v62 = vld [vmem:[#allocation5 + $0xc8] sm:$0xff]  ;;  %v214_v63 = vld [vmem:[#allocation5 + $0xd8] sm:$0xff] }
  0x36   :  { %v440_v0 = vpack.c.bf16 %v209_v61, %v207_v60  ;;  %v442_v1 = vpack.c.bf16 %v214_v63, %v212_v62  ;;  %v211_v2 = vld [vmem:[#allocation5 + $0xc0] sm:$0xff]  ;;  %v213_v3 = vld [vmem:[#allocation5 + $0xd0] sm:$0xff]  ;;  %v216_v15 = vld [vmem:[#allocation5 + $0xe8] sm:$0xff] }
  0x37   :  { %v444_v4 = vpack.c.bf16 %v213_v3, %v211_v2  ;;  %v330_v5 = vld [vmem:[%s642_s1] ss:$0 sm:$0xff]  ;;  %v218_v16 = vld [vmem:[#allocation5 + $0xf8] sm:$0xff]  ;;  %v217_v19 = vld [vmem:[#allocation5 + $0xf0] sm:$0xff] }
  0x38   :  { %401 = vmatpush3.bf16.msra.mxu0 %v398_v14  ;;  %429 = vmatpush1.bf16.msra.mxu1 %v428_v42  ;;  %v331_v7 = vld [vmem:[%s643_s2] ss:$0 sm:$0xff]  ;;  %v446_v17 = vpack.c.bf16 %v218_v16, %v216_v15 }
  0x39   :  { %403 = vmatprep.subr.bf16.mxu0 %v402_v29  ;;  %431 = vmatprep.subr.bf16.mxu1 %v430_v43  ;;  %v215_v18 = vld [vmem:[#allocation5 + $0xe0] sm:$0xff] }
  0x3a   :  { %v448_v20 = vpack.c.bf16 %v217_v19, %v215_v18  ;;  %v332_v22 = vld [vmem:[%s645_s4] ss:$0 sm:$0xff]  ;;  %s540_s4 = smov [#allocation7]  }
  0x3b   :  { %v219_v32 = vld [vmem:[%s647_s6] sm:$0x3]  ;;  %s317_s13 = sshll.u32 %s540_s4, 4  ;;  %s318_s13 = int_to_ptr.vmem [resolvable:$true] %s317_s13 }
  0x3c   :  { %405 = vmatpush3.bf16.msra.mxu0 %v402_v29  ;;  %433 = vmatpush1.bf16.msra.mxu1 %v432_v51  ;;  %v221_v29 = vlaneseq  ;;  %s504_s14 = scalar_lea.vmem %s318_s13, 512  ;;  %p509_p3 = scmp.lt.s32.totalorder %s318_s13, %s318_s13 }
  0x3d   :  { %407 = vmatprep.subr.bf16.mxu0 %v406_v39  ;;  %435 = vmatprep.subr.bf16.mxu1 %v434_v52  ;;  %p505_p2 = scmp.ne.s32.totalorder %s318_s13, %s504_s14  ;;  %p510_p4 = scmp.lt.s32.totalorder %s504_s14, %s504_s14 }
  0x3e   :  { %v222_v30 = vshrl.u32 %v221_v29, 7 }
  0x3f   :  { %p511_p5 = por %p510_p4, %p509_p3 }
  0x40   :  { %409 = vmatpush3.bf16.msra.mxu0 %v406_v39  ;;  %437 = vmatpush1.bf16.msra.mxu1 %v436_v58  ;;  %v223_v31 = vsub.s32 0, %v222_v30  ;;  %v227_v33 = vsub.s32 1, %v222_v30 }
  0x41   :  { %411 = vmatprep.subr.bf16.mxu0 %v410_v48  ;;  %439 = vmatprep.subr.bf16.mxu1 %v438_v59  ;;  %p512_p6 = pnand %p511_p5, %p505_p2 }
  0x42   :  { %v224_v34 = vrot.slane %v219_v32, %v223_v31  ;;  %v228_v35 = vrot.slane %v219_v32, %v227_v33 }
  0x44   :  { %413 = vmatpush3.bf16.msra.mxu0 %v410_v48  ;;  %441 = vmatpush1.bf16.msra.mxu1 %v440_v0 }
  0x45   :  { %415 = vmatprep.subr.bf16.mxu0 %v414_v57  ;;  %443 = vmatprep.subr.bf16.mxu1 %v442_v1 }
  0x48   :  { %417 = vmatpush3.bf16.msra.mxu0 %v414_v57  ;;  %445 = vmatpush1.bf16.msra.mxu1 %v444_v4 }
  0x49   :  { %447 = vmatprep.subr.bf16.mxu1 %v446_v17 }
  0x4c   :  { %449 = vmatpush1.bf16.msra.mxu1 %v448_v20 }
  0xa8   :  { %v62_v6 = vpop.permute.xlu0 %61 }
  0xa9   :  { %v75_v8 = vmul.f32 %v330_v5, %v62_v6 }
  0xab   :  { %v83_v9 = vadd.f32 %v331_v7, %v75_v8 }
  0xac   :  { %v67_v10 = vpop.permute.xlu0 %66 }
  0xad   :  { %v76_v11 = vmul.f32 %v330_v5, %v67_v10  ;;  %v85_v12 = vmax.f32 %v83_v9, 0.0 }
  0xaf   :  { %v84_v13 = vadd.f32 %v331_v7, %v76_v11  ;;  %383 = vmatprep.mubr.f32.mxu0 %v85_v12 }
  0xb1   :  { %v86_v14 = vmax.f32 %v84_v13, 0.0 }
  0xb3   :  { %384 = vmatmul.mubr.f32.vlgmr.msra.gmra.mrb[0].mxu0 %v86_v14 }
 0x186   :  { %v385_v23 = vpop.f32.mrb[0].mxu0 }
 0x187   :  { %v176_v24 = vpop.f32.mrb[1].mxu0  ;;  %v182_v26 = vadd.f32 %v385_v23, %v332_v22 }
 0x188   :  { %v177_v25 = vadd.f32 %v332_v22, %v176_v24 }
 0x189   :  { %v186_v28 = vmax.f32 %v182_v26, 0.0 }
 0x18a   :  { %v185_v27 = vmax.f32 %v177_v25, 0.0 }
 0x18c   :  { %296 = vmatmul.mubr.f32.vlgmr.msra.gmra.mrb[0].mxu1 %v185_v27 }
 0x18d   :  { %301 = vmatprep.mubr.f32.mxu1 %v539_v21 }
 0x190   :  { %302 = vmatmul.mubr.f32.gmra.mrb[2].mxu1 %v186_v28 }
 0x25f   :  { %v297_v36 = vpop.f32.mrb[0].mxu1 }
 0x260   :  { %v298_v37 = vadd.f32 %v297_v36, %v224_v34  ;;  %v299_v38 = vpop.f32.mrb[1].mxu1 }
 0x261   :  { %v300_v39 = vadd.f32 %v299_v38, %v228_v35 }
 0x262   :  { %308 = vst [vmem:[#allocation7] sm:$0xff] %v298_v37 }
 0x263   :  { %309 = vst [vmem:[#allocation7 + $0x8] sm:$0xff] %v300_v39  ;;  %v303_v40 = vpop.f32.mrb[2].mxu1 }
 0x264   :  { %v304_v41 = vadd.f32 %v303_v40, %v224_v34  ;;  %v305_v42 = vpop.f32.mrb[3].mxu1 }
 0x265   :  { %v306_v43 = vadd.f32 %v305_v42, %v228_v35 }
 0x266   :  { %310 = vst [vmem:[#allocation7 + $0x10] sm:$0xff] %v304_v41 }
 0x267   :  { %311 = vst [vmem:[#allocation7 + $0x18] sm:$0xff] %v306_v43 }
 0x268   :  { %515 = shalt.err (!%p512_p6)
}
 0x269   :  { %s516_s16 = scalar_lea.hbm %s648_s7, 512 }
 0x26a   :  { %p517_p7 = scmp.ne.s32.totalorder %s648_s7, %s516_s16  ;;  %p520_p8 = scmp.lt.u32.totalorder %s516_s16, %s648_s7 }
 0x26c   :  { %p522_p9 = pnand %p520_p8, %p517_p7 }
 0x26e   :  { %525 = shalt.err (!%p522_p9)
}
 0x26f   :  { %323 = dma.vmem_to_hbm [thread:$0]  %s318_s13, 512, %s648_s7, [#allocation4], %s536_s3, %s536_s3, %s537_s25  }
 0x270   :  { %530 = dma.done.wait [#allocation4], 512  }
 0x271   :  { %531 = vsyncadd [#allocation4], 4294966784 }
 0x272   :  { %327 = vsyncpa [#allocation3], 1 }
 0x273   :  { %328 = vsyncpa [#allocation6], 1 }
 0x274   :  { %329 = vsyncpa [#allocation4], 1 }

</bundles_post_ra>
